<compile_context>
chip_gen: v7x
topology: tpu7x:2x2x1
jax: 0.10.0
libtpu: 0.0.40
codegen_flags: <defaults>
</compile_context>

<pallas_src>
import functools

import jax
import jax.numpy as jnp
from jax.experimental import pallas as pl
from jax.experimental.pallas import tpu as pltpu


def _size_head_kernel(x_ref, w_ref, b_ref, pe_ref, po_ref, se_ref, so_ref,
                      o_ref, *, C: int, O: int, n_chunks: int, rows_in: int):
    """One grid step of conv1x1 -> maxpool(2,2) -> sigmoid.

    x_ref : [1, C, TH, TW]               f32 VMEM, TH = n_chunks * rows_in
    w_ref : [O, C]                       f32 SMEM
    b_ref : [O]                          f32 SMEM
    pe_ref/po_ref: [rows_in//2, rows_in] f32 VMEM (0/1 even/odd row selectors)
    se_ref/so_ref: [TW, TW//2]           f32 VMEM (0/1 even/odd col selectors)
    o_ref : [1, O, TH//2, TW//2]         f32 VMEM
    """
    pe = pe_ref[...]
    po = po_ref[...]
    se = se_ref[...]
    so = so_ref[...]
    rows_out = rows_in // 2
    for t in range(n_chunks):
        r0 = t * rows_in
        q0 = t * rows_out
        for o in range(O):
            acc = None
            for c in range(C):
                term = w_ref[o, c] * x_ref[0, c, r0:r0 + rows_in, :]  # VPU FMA
                acc = term if acc is None else acc + term
            # 2x2 max-pool: rows first (small selector matmuls), then columns
            # (selector matmul also compacts even lanes -> dense output tile).
            rows = jnp.maximum(
                jnp.dot(pe, acc, preferred_element_type=jnp.float32),
                jnp.dot(po, acc, preferred_element_type=jnp.float32))
            pooled = jnp.maximum(
                jnp.dot(rows, se, preferred_element_type=jnp.float32),
                jnp.dot(rows, so, preferred_element_type=jnp.float32))
            # Bias after max is exact (per-channel constant); sigmoid on EUP.
            o_ref[0, o, q0:q0 + rows_out, :] = jax.nn.sigmoid(
                pooled + b_ref[o]).astype(o_ref.dtype)


def _pick_tile_w(W2: int) -> int:
    # TW must be even and either a multiple of 256 (so TW//2 stays a multiple
    # of 128 lanes) that exactly divides W2, or the full extent W2.
    for cand in (256, 512, 768, 1024):
        if cand <= W2 and W2 % cand == 0:
            return cand
    return W2


def _pick_rows(H2: int, TW: int, C: int):
    # rows_in: rows per in-kernel chunk; keep each [rows_in, TW] f32 value at
    # <= 16 vregs so conv/pool intermediates never spill.
    rows_in = None
    for cand in (64, 48, 32, 16):
        if cand <= H2 and cand * TW <= 16 * 1024 and H2 % cand == 0:
            rows_in = cand
            break
    if rows_in is None:          # small / awkward H: one full-extent chunk
        return H2, 1
    # n_chunks: grow the per-step x block toward ~1 MiB to amortize the
    # ~0.35us/step grid overhead (exact divisors only -> dense stores).
    n_chunks = 1
    for n in (8, 6, 4, 3, 2):
        if H2 % (n * rows_in) == 0 and C * n * rows_in * TW * 4 <= (1 << 20):
            n_chunks = n
            break
    return rows_in, n_chunks


def size_head_forward(x_nchw, weight, bias):
    """x_nchw: [B, C, H, W], weight: [O, C, 1, 1], bias: [O] -> [B, O, H//2, W//2]."""
    B, C, H, W = x_nchw.shape
    O = weight.shape[0]
    Ho, Wo = H // 2, W // 2
    H2, W2 = 2 * Ho, 2 * Wo

    x = x_nchw.astype(jnp.float32)
    if (H2, W2) != (H, W):                     # MaxPool2d floor for odd H / W
        x = x[:, :, :H2, :W2]

    w2d = weight.reshape(O, C).astype(jnp.float32)   # -> SMEM scalars
    b1d = bias.reshape(O).astype(jnp.float32)        # -> SMEM scalars

    TW = _pick_tile_w(W2)
    rows_in, n_chunks = _pick_rows(H2, TW, C)
    TH = rows_in * n_chunks
    TWo, rows_out = TW // 2, rows_in // 2
    THo = TH // 2

    # Exact 0/1 selection matrices: even/odd row and column extractors.
    ar_in, ar_out = jnp.arange(rows_in), jnp.arange(rows_out)
    pe = (ar_in[None, :] == 2 * ar_out[:, None]).astype(jnp.float32)
    po = (ar_in[None, :] == 2 * ar_out[:, None] + 1).astype(jnp.float32)
    aw_in, aw_out = jnp.arange(TW), jnp.arange(TWo)
    se = (aw_in[:, None] == 2 * aw_out[None, :]).astype(jnp.float32)
    so = (aw_in[:, None] == 2 * aw_out[None, :] + 1).astype(jnp.float32)

    grid = (B, H2 // TH, W2 // TW)
    kernel = functools.partial(_size_head_kernel, C=C, O=O,
                               n_chunks=n_chunks, rows_in=rows_in)
    return pl.pallas_call(
        kernel,
        out_shape=jax.ShapeDtypeStruct((B, O, Ho, Wo), jnp.float32),
        grid=grid,
        in_specs=[
            pl.BlockSpec((1, C, TH, TW), lambda b, i, j: (b, 0, i, j)),
            pl.BlockSpec((O, C), lambda b, i, j: (0, 0),
                         memory_space=pltpu.MemorySpace.SMEM),
            pl.BlockSpec((O,), lambda b, i, j: (0,),
                         memory_space=pltpu.MemorySpace.SMEM),
            pl.BlockSpec((rows_out, rows_in), lambda b, i, j: (0, 0)),
            pl.BlockSpec((rows_out, rows_in), lambda b, i, j: (0, 0)),
            pl.BlockSpec((TW, TWo), lambda b, i, j: (0, 0)),
            pl.BlockSpec((TW, TWo), lambda b, i, j: (0, 0)),
        ],
        out_specs=pl.BlockSpec((1, O, THo, TWo), lambda b, i, j: (b, 0, i, j)),
        compiler_params=pltpu.CompilerParams(
            dimension_semantics=("parallel", "parallel", "parallel")),
    )(x, w2d, b1d, pe, po, se, so)


def _reference_forward(x_nchw, weight, bias):
    # Pure-JAX reference matching PyTorch semantics (f32-accurate contraction).
    B, C, H, W = x_nchw.shape
    O = weight.shape[0]
    w = weight.reshape(O, C)
    y = jnp.einsum("bchw,oc->bohw", x_nchw, w,
                   precision=jax.lax.Precision.HIGHEST)
    y = y + bias[None, :, None, None]
    Ho, Wo = H // 2, W // 2
    y = y[:, :, : 2 * Ho, : 2 * Wo].reshape(B, O, Ho, 2, Wo, 2)
    y = jnp.max(y, axis=(3, 5))
    return jax.nn.sigmoid(y)


if __name__ == "__main__":
    B, C, H, W = 2, 4, 16, 16          # in_channels = 4
    O = 2                              # Size_Head fixed out_channels

    key = jax.random.PRNGKey(0)
    kx, kw, kb = jax.random.split(key, 3)
    x = jax.random.normal(kx, (B, C, H, W), dtype=jnp.float32)
    bound = 1.0 / (C ** 0.5)
    weight = jax.random.uniform(kw, (O, C, 1, 1), minval=-bound, maxval=bound,
                                dtype=jnp.float32)
    bias = jax.random.uniform(kb, (O,), minval=-bound, maxval=bound,
                              dtype=jnp.float32)

    out = jax.block_until_ready(size_head_forward(x, weight, bias))
    ref = _reference_forward(x, weight, bias)
    assert out.shape == (B, O, H // 2, W // 2), out.shape
    assert jnp.allclose(out, ref, atol=1e-5, rtol=1e-5), \
        float(jnp.max(jnp.abs(out - ref)))

    print("KERNEL_OK")
</pallas_src>

<mosaic_0001>
module attributes {stable_mosaic.version = 11 : i64} {
  func.func @_size_head_kernel(%arg0: i32, %arg1: i32, %arg2: i32, %arg3: memref<1x4x16x16xf32, #tpu.memory_space<vmem>>, %arg4: memref<2x4xf32, #tpu.memory_space<smem>>, %arg5: memref<2xf32, #tpu.memory_space<smem>>, %arg6: memref<8x16xf32, #tpu.memory_space<vmem>>, %arg7: memref<8x16xf32, #tpu.memory_space<vmem>>, %arg8: memref<16x8xf32, #tpu.memory_space<vmem>>, %arg9: memref<16x8xf32, #tpu.memory_space<vmem>>, %arg10: memref<1x2x8x8xf32, #tpu.memory_space<vmem>>) attributes {dimension_semantics = [#tpu.dimension_semantics<parallel>, #tpu.dimension_semantics<parallel>, #tpu.dimension_semantics<parallel>], iteration_bounds = array<i64: 2, 1, 1>, scalar_prefetch = 0 : i64, scratch_operands = 0 : i64, tpu.core_type = #tpu.core_type<tc>, window_params = [{transform_indices = @transform_0, window_bounds = array<i64: 1, 4, 16, 16>}, {transform_indices = @transform_1, window_bounds = array<i64: 2, 4>}, {transform_indices = @transform_2, window_bounds = array<i64: 2>}, {pipeline_mode = #tpu.pipeline_mode<synchronous>, transform_indices = @transform_3, window_bounds = array<i64: 8, 16>}, {pipeline_mode = #tpu.pipeline_mode<synchronous>, transform_indices = @transform_4, window_bounds = array<i64: 8, 16>}, {pipeline_mode = #tpu.pipeline_mode<synchronous>, transform_indices = @transform_5, window_bounds = array<i64: 16, 8>}, {pipeline_mode = #tpu.pipeline_mode<synchronous>, transform_indices = @transform_6, window_bounds = array<i64: 16, 8>}, {transform_indices = @transform_7, window_bounds = array<i64: 1, 2, 8, 8>}]} {
    %c0 = arith.constant 0 : index
    %c0_0 = arith.constant 0 : index
    %0 = vector.load %arg6[%c0, %c0_0] : memref<8x16xf32, #tpu.memory_space<vmem>>, vector<8x16xf32>
    %c0_1 = arith.constant 0 : index
    %c0_2 = arith.constant 0 : index
    %1 = vector.load %arg7[%c0_1, %c0_2] : memref<8x16xf32, #tpu.memory_space<vmem>>, vector<8x16xf32>
    %c0_3 = arith.constant 0 : index
    %c0_4 = arith.constant 0 : index
    %2 = vector.load %arg8[%c0_3, %c0_4] : memref<16x8xf32, #tpu.memory_space<vmem>>, vector<16x8xf32>
    %c0_5 = arith.constant 0 : index
    %c0_6 = arith.constant 0 : index
    %3 = vector.load %arg9[%c0_5, %c0_6] : memref<16x8xf32, #tpu.memory_space<vmem>>, vector<16x8xf32>
    %c0_7 = arith.constant 0 : index
    %c0_8 = arith.constant 0 : index
    %4 = memref.load %arg4[%c0_7, %c0_8] : memref<2x4xf32, #tpu.memory_space<smem>>
    %c0_9 = arith.constant 0 : index
    %c0_10 = arith.constant 0 : index
    %c0_11 = arith.constant 0 : index
    %c0_12 = arith.constant 0 : index
    %5 = vector.load %arg3[%c0_9, %c0_10, %c0_11, %c0_12] : memref<1x4x16x16xf32, #tpu.memory_space<vmem>>, vector<1x1x16x16xf32>
    %6 = vector.shape_cast %5 : vector<1x1x16x16xf32> to vector<16x16xf32>
    %7 = vector.broadcast %4 : f32 to vector<16x16xf32>
    %8 = arith.mulf %7, %6 : vector<16x16xf32>
    %c0_13 = arith.constant 0 : index
    %c1 = arith.constant 1 : index
    %9 = memref.load %arg4[%c0_13, %c1] : memref<2x4xf32, #tpu.memory_space<smem>>
    %c0_14 = arith.constant 0 : index
    %c1_15 = arith.constant 1 : index
    %c0_16 = arith.constant 0 : index
    %c0_17 = arith.constant 0 : index
    %10 = vector.load %arg3[%c0_14, %c1_15, %c0_16, %c0_17] : memref<1x4x16x16xf32, #tpu.memory_space<vmem>>, vector<1x1x16x16xf32>
    %11 = vector.shape_cast %10 : vector<1x1x16x16xf32> to vector<16x16xf32>
    %12 = vector.broadcast %9 : f32 to vector<16x16xf32>
    %13 = arith.mulf %12, %11 : vector<16x16xf32>
    %14 = arith.addf %8, %13 : vector<16x16xf32>
    %c0_18 = arith.constant 0 : index
    %c2 = arith.constant 2 : index
    %15 = memref.load %arg4[%c0_18, %c2] : memref<2x4xf32, #tpu.memory_space<smem>>
    %c0_19 = arith.constant 0 : index
    %c2_20 = arith.constant 2 : index
    %c0_21 = arith.constant 0 : index
    %c0_22 = arith.constant 0 : index
    %16 = vector.load %arg3[%c0_19, %c2_20, %c0_21, %c0_22] : memref<1x4x16x16xf32, #tpu.memory_space<vmem>>, vector<1x1x16x16xf32>
    %17 = vector.shape_cast %16 : vector<1x1x16x16xf32> to vector<16x16xf32>
    %18 = vector.broadcast %15 : f32 to vector<16x16xf32>
    %19 = arith.mulf %18, %17 : vector<16x16xf32>
    %20 = arith.addf %14, %19 : vector<16x16xf32>
    %c0_23 = arith.constant 0 : index
    %c3 = arith.constant 3 : index
    %21 = memref.load %arg4[%c0_23, %c3] : memref<2x4xf32, #tpu.memory_space<smem>>
    %c0_24 = arith.constant 0 : index
    %c3_25 = arith.constant 3 : index
    %c0_26 = arith.constant 0 : index
    %c0_27 = arith.constant 0 : index
    %22 = vector.load %arg3[%c0_24, %c3_25, %c0_26, %c0_27] : memref<1x4x16x16xf32, #tpu.memory_space<vmem>>, vector<1x1x16x16xf32>
    %23 = vector.shape_cast %22 : vector<1x1x16x16xf32> to vector<16x16xf32>
    %24 = vector.broadcast %21 : f32 to vector<16x16xf32>
    %25 = arith.mulf %24, %23 : vector<16x16xf32>
    %26 = arith.addf %20, %25 : vector<16x16xf32>
    %cst = arith.constant dense<0.000000e+00> : vector<8x16xf32>
    %27 = tpu.matmul %0, %26, %cst {dimension_numbers = #tpu.dot_dimension_numbers<[1], [0], [0], [1], [0, 0, 1, 1], [], []>} : vector<8x16xf32>, vector<16x16xf32>, vector<8x16xf32> -> vector<8x16xf32>
    %cst_28 = arith.constant dense<0.000000e+00> : vector<8x16xf32>
    %28 = tpu.matmul %1, %26, %cst_28 {dimension_numbers = #tpu.dot_dimension_numbers<[1], [0], [0], [1], [0, 0, 1, 1], [], []>} : vector<8x16xf32>, vector<16x16xf32>, vector<8x16xf32> -> vector<8x16xf32>
    %29 = arith.maximumf %27, %28 : vector<8x16xf32>
    %cst_29 = arith.constant dense<0.000000e+00> : vector<8x8xf32>
    %30 = tpu.matmul %29, %2, %cst_29 {dimension_numbers = #tpu.dot_dimension_numbers<[1], [0], [0], [1], [0, 0, 1, 1], [], []>} : vector<8x16xf32>, vector<16x8xf32>, vector<8x8xf32> -> vector<8x8xf32>
    %cst_30 = arith.constant dense<0.000000e+00> : vector<8x8xf32>
    %31 = tpu.matmul %29, %3, %cst_30 {dimension_numbers = #tpu.dot_dimension_numbers<[1], [0], [0], [1], [0, 0, 1, 1], [], []>} : vector<8x16xf32>, vector<16x8xf32>, vector<8x8xf32> -> vector<8x8xf32>
    %32 = arith.maximumf %30, %31 : vector<8x8xf32>
    %c0_31 = arith.constant 0 : index
    %33 = memref.load %arg5[%c0_31] : memref<2xf32, #tpu.memory_space<smem>>
    %34 = vector.broadcast %33 : f32 to vector<8x8xf32>
    %35 = arith.addf %32, %34 : vector<8x8xf32>
    %36 = arith.negf %35 : vector<8x8xf32>
    %37 = math.exp %36 : vector<8x8xf32>
    %cst_32 = arith.constant 1.000000e+00 : f32
    %38 = vector.broadcast %cst_32 : f32 to vector<8x8xf32>
    %39 = arith.addf %38, %37 : vector<8x8xf32>
    %40 = arith.divf %38, %39 : vector<8x8xf32>
    %c0_33 = arith.constant 0 : index
    %c0_34 = arith.constant 0 : index
    %c0_35 = arith.constant 0 : index
    %c0_36 = arith.constant 0 : index
    %41 = vector.load %arg10[%c0_33, %c0_34, %c0_35, %c0_36] : memref<1x2x8x8xf32, #tpu.memory_space<vmem>>, vector<1x1x8x8xf32>
    %42 = vector.shape_cast %41 : vector<1x1x8x8xf32> to vector<8x8xf32>
    %43 = vector.shape_cast %40 : vector<8x8xf32> to vector<1x1x8x8xf32>
    tpu.vector_store %arg10[%c0_33, %c0_34, %c0_35, %c0_36], %43 {strides = array<i32>} : memref<1x2x8x8xf32, #tpu.memory_space<vmem>>, vector<1x1x8x8xf32>,
    %c1_37 = arith.constant 1 : index
    %c0_38 = arith.constant 0 : index
    %44 = memref.load %arg4[%c1_37, %c0_38] : memref<2x4xf32, #tpu.memory_space<smem>>
    %c0_39 = arith.constant 0 : index
    %c0_40 = arith.constant 0 : index
    %c0_41 = arith.constant 0 : index
    %c0_42 = arith.constant 0 : index
    %45 = vector.load %arg3[%c0_39, %c0_40, %c0_41, %c0_42] : memref<1x4x16x16xf32, #tpu.memory_space<vmem>>, vector<1x1x16x16xf32>
    %46 = vector.shape_cast %45 : vector<1x1x16x16xf32> to vector<16x16xf32>
    %47 = vector.broadcast %44 : f32 to vector<16x16xf32>
    %48 = arith.mulf %47, %46 : vector<16x16xf32>
    %c1_43 = arith.constant 1 : index
    %c1_44 = arith.constant 1 : index
    %49 = memref.load %arg4[%c1_43, %c1_44] : memref<2x4xf32, #tpu.memory_space<smem>>
    %c0_45 = arith.constant 0 : index
    %c1_46 = arith.constant 1 : index
    %c0_47 = arith.constant 0 : index
    %c0_48 = arith.constant 0 : index
    %50 = vector.load %arg3[%c0_45, %c1_46, %c0_47, %c0_48] : memref<1x4x16x16xf32, #tpu.memory_space<vmem>>, vector<1x1x16x16xf32>
    %51 = vector.shape_cast %50 : vector<1x1x16x16xf32> to vector<16x16xf32>
    %52 = vector.broadcast %49 : f32 to vector<16x16xf32>
    %53 = arith.mulf %52, %51 : vector<16x16xf32>
    %54 = arith.addf %48, %53 : vector<16x16xf32>
    %c1_49 = arith.constant 1 : index
    %c2_50 = arith.constant 2 : index
    %55 = memref.load %arg4[%c1_49, %c2_50] : memref<2x4xf32, #tpu.memory_space<smem>>
    %c0_51 = arith.constant 0 : index
    %c2_52 = arith.constant 2 : index
    %c0_53 = arith.constant 0 : index
    %c0_54 = arith.constant 0 : index
    %56 = vector.load %arg3[%c0_51, %c2_52, %c0_53, %c0_54] : memref<1x4x16x16xf32, #tpu.memory_space<vmem>>, vector<1x1x16x16xf32>
    %57 = vector.shape_cast %56 : vector<1x1x16x16xf32> to vector<16x16xf32>
    %58 = vector.broadcast %55 : f32 to vector<16x16xf32>
    %59 = arith.mulf %58, %57 : vector<16x16xf32>
    %60 = arith.addf %54, %59 : vector<16x16xf32>
    %c1_55 = arith.constant 1 : index
    %c3_56 = arith.constant 3 : index
    %61 = memref.load %arg4[%c1_55, %c3_56] : memref<2x4xf32, #tpu.memory_space<smem>>
    %c0_57 = arith.constant 0 : index
    %c3_58 = arith.constant 3 : index
    %c0_59 = arith.constant 0 : index
    %c0_60 = arith.constant 0 : index
    %62 = vector.load %arg3[%c0_57, %c3_58, %c0_59, %c0_60] : memref<1x4x16x16xf32, #tpu.memory_space<vmem>>, vector<1x1x16x16xf32>
    %63 = vector.shape_cast %62 : vector<1x1x16x16xf32> to vector<16x16xf32>
    %64 = vector.broadcast %61 : f32 to vector<16x16xf32>
    %65 = arith.mulf %64, %63 : vector<16x16xf32>
    %66 = arith.addf %60, %65 : vector<16x16xf32>
    %cst_61 = arith.constant dense<0.000000e+00> : vector<8x16xf32>
    %67 = tpu.matmul %0, %66, %cst_61 {dimension_numbers = #tpu.dot_dimension_numbers<[1], [0], [0], [1], [0, 0, 1, 1], [], []>} : vector<8x16xf32>, vector<16x16xf32>, vector<8x16xf32> -> vector<8x16xf32>
    %cst_62 = arith.constant dense<0.000000e+00> : vector<8x16xf32>
    %68 = tpu.matmul %1, %66, %cst_62 {dimension_numbers = #tpu.dot_dimension_numbers<[1], [0], [0], [1], [0, 0, 1, 1], [], []>} : vector<8x16xf32>, vector<16x16xf32>, vector<8x16xf32> -> vector<8x16xf32>
    %69 = arith.maximumf %67, %68 : vector<8x16xf32>
    %cst_63 = arith.constant dense<0.000000e+00> : vector<8x8xf32>
    %70 = tpu.matmul %69, %2, %cst_63 {dimension_numbers = #tpu.dot_dimension_numbers<[1], [0], [0], [1], [0, 0, 1, 1], [], []>} : vector<8x16xf32>, vector<16x8xf32>, vector<8x8xf32> -> vector<8x8xf32>
    %cst_64 = arith.constant dense<0.000000e+00> : vector<8x8xf32>
    %71 = tpu.matmul %69, %3, %cst_64 {dimension_numbers = #tpu.dot_dimension_numbers<[1], [0], [0], [1], [0, 0, 1, 1], [], []>} : vector<8x16xf32>, vector<16x8xf32>, vector<8x8xf32> -> vector<8x8xf32>
    %72 = arith.maximumf %70, %71 : vector<8x8xf32>
    %c1_65 = arith.constant 1 : index
    %73 = memref.load %arg5[%c1_65] : memref<2xf32, #tpu.memory_space<smem>>
    %74 = vector.broadcast %73 : f32 to vector<8x8xf32>
    %75 = arith.addf %72, %74 : vector<8x8xf32>
    %76 = arith.negf %75 : vector<8x8xf32>
    %77 = math.exp %76 : vector<8x8xf32>
    %cst_66 = arith.constant 1.000000e+00 : f32
    %78 = vector.broadcast %cst_66 : f32 to vector<8x8xf32>
    %79 = arith.addf %78, %77 : vector<8x8xf32>
    %80 = arith.divf %78, %79 : vector<8x8xf32>
    %c0_67 = arith.constant 0 : index
    %c1_68 = arith.constant 1 : index
    %c0_69 = arith.constant 0 : index
    %c0_70 = arith.constant 0 : index
    %81 = vector.load %arg10[%c0_67, %c1_68, %c0_69, %c0_70] : memref<1x2x8x8xf32, #tpu.memory_space<vmem>>, vector<1x1x8x8xf32>
    %82 = vector.shape_cast %81 : vector<1x1x8x8xf32> to vector<8x8xf32>
    %83 = vector.shape_cast %80 : vector<8x8xf32> to vector<1x1x8x8xf32>
    tpu.vector_store %arg10[%c0_67, %c1_68, %c0_69, %c0_70], %83 {strides = array<i32>} : memref<1x2x8x8xf32, #tpu.memory_space<vmem>>, vector<1x1x8x8xf32>,
    return
  }
  func.func @transform_0(%arg0: i32, %arg1: i32, %arg2: i32) -> (i32, i32, i32, i32) {
    %c0_i32 = arith.constant 0 : i32
    %c0_i32_0 = arith.constant 0 : i32
    return %arg0, %c0_i32, %arg1, %arg2 : i32, i32, i32, i32
  }
  func.func @transform_1(%arg0: i32, %arg1: i32, %arg2: i32) -> (i32, i32) {
    %c0_i32 = arith.constant 0 : i32
    %c0_i32_0 = arith.constant 0 : i32
    %c0_i32_1 = arith.constant 0 : i32
    return %c0_i32, %c0_i32_0 : i32, i32
  }
  func.func @transform_2(%arg0: i32, %arg1: i32, %arg2: i32) -> i32 {
    %c0_i32 = arith.constant 0 : i32
    %c0_i32_0 = arith.constant 0 : i32
    return %c0_i32 : i32
  }
  func.func @transform_3(%arg0: i32, %arg1: i32, %arg2: i32) -> (i32, i32) {
    %c0_i32 = arith.constant 0 : i32
    %c0_i32_0 = arith.constant 0 : i32
    %c0_i32_1 = arith.constant 0 : i32
    return %c0_i32, %c0_i32_0 : i32, i32
  }
  func.func @transform_4(%arg0: i32, %arg1: i32, %arg2: i32) -> (i32, i32) {
    %c0_i32 = arith.constant 0 : i32
    %c0_i32_0 = arith.constant 0 : i32
    %c0_i32_1 = arith.constant 0 : i32
    return %c0_i32, %c0_i32_0 : i32, i32
  }
  func.func @transform_5(%arg0: i32, %arg1: i32, %arg2: i32) -> (i32, i32) {
    %c0_i32 = arith.constant 0 : i32
    %c0_i32_0 = arith.constant 0 : i32
    %c0_i32_1 = arith.constant 0 : i32
    return %c0_i32, %c0_i32_0 : i32, i32
  }
  func.func @transform_6(%arg0: i32, %arg1: i32, %arg2: i32) -> (i32, i32) {
    %c0_i32 = arith.constant 0 : i32
    %c0_i32_0 = arith.constant 0 : i32
    %c0_i32_1 = arith.constant 0 : i32
    return %c0_i32, %c0_i32_0 : i32, i32
  }
  func.func @transform_7(%arg0: i32, %arg1: i32, %arg2: i32) -> (i32, i32, i32, i32) {
    %c0_i32 = arith.constant 0 : i32
    %c0_i32_0 = arith.constant 0 : i32
    return %arg0, %c0_i32, %arg1, %arg2 : i32, i32, i32, i32
  }
}

</mosaic_0001>

<bundles_post_ra>
// kernel: tpu_custom_call.1
= control target key start
LH: loop header
LB: loop body
LE: loop exit
PB: predicated region body
PF: predicated region fallthrough
CT: control target
= control target key end

     0   :  { %s1887_s0 = inlined_call_operand.hbm [shape: f32[2,4,16,16], index: 0, kind: input, shape index: {}]   ;;  %s1888_s1 = inlined_call_operand.vmem [shape: f32[2,4], index: 1, kind: input, shape index: {}]   ;;  %s1889_s2 = inlined_call_operand.vmem [shape: f32[2], index: 2, kind: input, shape index: {}]   ;;  %s1890_s3 = inlined_call_operand.vmem [shape: f32[8,16], index: 3, kind: input, shape index: {}]   ;;  %s1891_s4 = inlined_call_operand.vmem [shape: f32[8,16], index: 4, kind: input, shape index: {}]   ;;  %s1892_s5 = inlined_call_operand.vmem [shape: f32[16,8], index: 5, kind: input, shape index: {}]   ;;  %s1893_s6 = inlined_call_operand.vmem [shape: f32[16,8], index: 6, kind: input, shape index: {}]   ;;  %s1894_s7 = inlined_call_operand.hbm [shape: f32[2,2,8,8], index: 7, kind: output, shape index: {}]  }
   0x1   :  { %1903 = sst [smem:[#allocation15_spill]] %s1888_s1 }
   0x2   :  { %1904 = sst [smem:[#allocation16_spill]] %s1889_s2 }
   0x3   :  { %12 = vsyncpa [#allocation3], 0 }
   0x4   :  { %14 = vsyncpa [#allocation3 + $0x1], 0 }
   0x5   :  { %15 = vsyncpa [#allocation5], 0 }
   0x6   :  { %16 = vsyncpa [#allocation8], 0 }
   0x7   :  { %17 = vsyncpa [#allocation4], 0 }
   0x8   :  { %19 = vsyncpa [#allocation4 + $0x1], 0  ;;  %s1609_s24 = smov 0   ;;  %s1611_s25 = smov 0  }
   0x9   :  { %s1613_s26 = smov 0   ;;  %s1615_s27 = smov 0  }
   0xa   :  { %s1617_s28 = smov 0   ;;  %s1619_s29 = smov 0  }
   0xb LB: > { %1905 = sst [smem:[#allocation14_spill]] %s1556_s29  ;;  %s1152_s30 = sadd.s32 4294967295, %s1556_s29   ;;  %s1556_s29 = sphi %s1619_s29, %s25_s29   ;;  %s1552_s28 = sphi %s1617_s28, %s1928_s28   ;;  %s1548_s27 = sphi %s1615_s27, %s1927_s27   ;;  %s1544_s26 = sphi %s1613_s26, %s1926_s26   ;;  %s1540_s25 = sphi %s1611_s25, %s1925_s25   ;;  %s1536_s24 = sphi %s1609_s24, %s1924_s24  }
   0xc   : > { %s1153_s8 = sadd.s32 4294967294, %s1556_s29   ;;  %s55_s9 = sadd.s32 1, %s1544_s26 }
   0xd   : > { %p62_p0 = scmp.ne.s32.totalorder %s1544_s26, %s1540_s25  ;;  %p63_p1 = scmp.eq.s32.totalorder %s1556_s29, 0 }
   0xe   : > { %p68_p2 = scmp.ne.s32.totalorder %s1540_s25, %s1536_s24  ;;  %p1647_p3 = scmp.eq.s32.totalorder %s1152_s30, 0 }
   0xf   : > { %p222_p4 = scmp.eq.s32.totalorder %s1152_s30, 1  ;;  %p1651_p5 = por %p63_p1, %p62_p0 }
  0x10   : > { %s1906_s10 = scalar_select %p1647_p3, 1, 0 }
  0x11   : > { %p228_p6 = scmp.eq.s32.totalorder %s1153_s8, 1  ;;  %p1657_p7 = por %p1647_p3, %p68_p2 }
  0x12   : > { %p1661_p8 = por %p222_p4, %p62_p0  ;;  %p1154_p10 = scmp.ge.s32.totalorder %s1556_s29, 1 }
  0x13   : > { %s1908_s12 = scalar_select %p1657_p7, 1, 0 }
  0x14   : > { %s1909_s13 = scalar_select %p1661_p8, 1, 0 }
  0x15   : > { %p1665_p9 = por %p228_p6, %p68_p2  ;;  %p235_p11 = scmp.lt.s32.totalorder %s1556_s29, 3 }
  0x16   : > { %s1911_s1 = sld [smem:[#allocation15_spill]]  ;;  %p1337_p0 = scmp.lt.s32.totalorder %s1556_s29, 2 }
  0x17   : > { %s1910_s14 = scalar_select %p1665_p9, 1, 0 }
  0x18   : > { %p1674_p12 = pnand %p1154_p10, %p235_p11  ;;  %s1913_s2 = sld [smem:[#allocation16_spill]] }
  0x19   : > { %p1687_p2 = pnand %p1337_p0, %p1651_p5 }
  0x1a   : > { %s1912_s18 = scalar_select %p1674_p12, 1, 0 }
  0x1b   : > { %p1320_p1 = pneg %p1674_p12 }
  0x1c   : > { %s248_s17 = sshll.u32 %s1911_s1, 4  ;;  %s249_s17 = int_to_ptr.vmem [resolvable:$true] %s248_s17 }
  0x1d   : > { %s1914_s22 = scalar_select %p1687_p2, 1, 0 }
  0x1e   : > { %s259_s21 = sshll.u32 %s1913_s2, 4  ;;  %p1693_p4 = pnand %p1320_p1, %p1647_p3  ;;  %s260_s21 = int_to_ptr.vmem [resolvable:$true] %s259_s21 }
  0x1f   : > { %s1406_s30 = scalar_lea.vmem %s249_s17, 32  ;;  %p1414_p9 = scmp.lt.s32.totalorder %s249_s17, %s249_s17 }
  0x20   : > { %p1407_p6 = scmp.ne.s32.totalorder %s249_s17, %s1406_s30  ;;  %p1408_p10 = pneg %p1693_p4 }
  0x21   : > { %p1415_p8 = scmp.lt.s32.totalorder %s1406_s30, %s1406_s30 }
  0x22   : > { %p1409_p11 = pnand %p1408_p10, %p1407_p6 }
  0x23   : > { %p1416_p7 = por %p1415_p8, %p1414_p9 }
  0x24   : > { %p1410_p13 = pneg %p1409_p11 }
  0x26   : > { %p1417_p5 = pnand %p1416_p7, %p1410_p13 }
  0x28   : > { %1420 = shalt.err (!%p1417_p5)
}
  0x29   : > { %s1558_s8 = smov [#allocation6]   ;;  %s1421_s11 = scalar_lea.vmem %s260_s21, 16 }
  0x2a   : > { %1323 = dma.vmem_to_smem (!%p1693_p4), %s249_s17, 32, %s1558_s8, [#allocation5]  }
  0x2b   : > { %p1422_p0 = scmp.ne.s32.totalorder %s260_s21, %s1421_s11  ;;  %p1429_p12 = scmp.lt.s32.totalorder %s260_s21, %s260_s21 }
  0x2c   : > { %p1430_p2 = scmp.lt.s32.totalorder %s1421_s11, %s1421_s11 }
  0x2d   : > { %p1424_p1 = pnand %p1422_p0, %p1408_p10 }
  0x2e   : > { %p1431_p6 = por %p1430_p2, %p1429_p12 }
  0x2f   : > { %p1425_p3 = pneg %p1424_p1 }
  0x31   : > { %p1432_p11 = pnand %p1431_p6, %p1425_p3 }
  0x33   : > { %1435 = shalt.err (!%p1432_p11)
}
  0x34   : > { %s1559_s15 = smov [#allocation7]   ;;  %s44_s16 = sadd.s32 1, %s1552_s28 }
  0x35   : > { %1326 = dma.vmem_to_smem (!%p1693_p4), %s260_s21, 16, %s1559_s15, [#allocation8]  }
  0x36   : > { %s282_s17 = sand.u32 1, %s1544_s26   ;;  %p46_p7 = scmp.ge.s32.totalorder %s44_s16, 2 }
  0x37   : > { %s1158_s19 = sshll.u32 %s282_s17, 6  ;;  %s1202_s20 = sshll.u32 %s1552_s28, 10 }
  0x38   : > { %s1930_s16 = smov (%p46_p7, %s44_s16), 0  ;;  %s1711_s23 = scalar_lea.hbm %s1887_s0, %s1202_s20 }
  0x39   : > { %s48_s11 = ssub.s32 %s1552_s28, %s1930_s16  ;;  %s286_s21 = scalar_lea.vmem [#allocation2], %s1158_s19 }
  0x3a   : > { %s296_s15 = sshll.u32 %s286_s21, 4  ;;  %p53_p3 = scmp.eq.s32.totalorder %s48_s11, 0  ;;  %s1715_s15 = int_to_ptr.vmem [resolvable:$true] %s296_s15 }
  0x3b   : > { %s1722_s2 = scalar_lea.sflag [#allocation3], %s282_s17  ;;  %s1436_s29 = scalar_lea.hbm %s1711_s23, 1024 }
  0x3c   : > { %s1720_s1 = scalar_select %p53_p3, %s1544_s26, %s55_s9  }
  0x3d   : > { %p1437_p8 = scmp.ne.s32.totalorder %s1711_s23, %s1436_s29  ;;  %p1916_p9 = scmp.ne.s32.totalorder %s1914_s22, 0 }
  0x3e   : > { %s1441_s19 = scalar_lea.hbm %s1887_s0, 2048  ;;  %p1442_p4 = scmp.lt.u32.totalorder %s1711_s23, %s1887_s0 }
  0x3f   : > { %p1438_p12 = pneg %p1916_p9  ;;  %p1443_p10 = scmp.lt.u32.totalorder %s1441_s19, %s1436_s29 }
  0x40   : > { %p1445_p0 = scmp.lt.u32.totalorder %s1436_s29, %s1711_s23 }
  0x41   : > { %p1439_p13 = pnand %p1438_p12, %p1437_p8  ;;  %p1444_p5 = por %p1443_p10, %p1442_p4 }
  0x43   : > { %p1440_p2 = pneg %p1439_p13  ;;  %p1446_p1 = por %p1445_p0, %p1444_p5 }
  0x45   : > { %p1447_p6 = pnand %p1446_p1, %p1440_p2 }
  0x47   : > { %1450 = shalt.err (!%p1447_p6)
}
  0x48   : > { %s1451_s9 = scalar_lea.vmem %s1715_s15, 1024  ;;  %s1560_s17 = smov [#allocation2]  }
  0x49   : > { %p1452_p11 = scmp.ne.s32.totalorder %s1715_s15, %s1451_s9  ;;  %s1456_s21 = sshll.u32 %s1560_s17, 4  ;;  %s1457_s21 = int_to_ptr.vmem [resolvable:$false] %s1456_s21 }
  0x4a   : > { %s1458_s20 = scalar_lea.vmem %s1457_s21, 2048  ;;  %p1459_p8 = scmp.lt.s32.totalorder %s1715_s15, %s1457_s21 }
  0x4b   : > { %p1454_p7 = pnand %p1452_p11, %p1438_p12  ;;  %p1460_p13 = scmp.lt.s32.totalorder %s1458_s20, %s1451_s9 }
  0x4d   : > { %p1455_p3 = pneg %p1454_p7  ;;  %p1461_p4 = por %p1460_p13, %p1459_p8 }
  0x4f   : > { %p1462_p10 = pnand %p1461_p4, %p1455_p3 }
  0x51   : > { %1465 = shalt.err (!%p1462_p10)
}
  0x52   : > { %s1561_s29 = smov 128   ;;  %s1562_s30 = smov 8  }
  0x53   : > { %1330 = dma.hbm_to_vmem [thread:$0]  (!%p1916_p9), %s1711_s23, 1024, %s1715_s15, %s1722_s2, %s1561_s29, %s1561_s29, %s1562_s30  }
  0x54   : > { %p1917_p12 = scmp.ne.s32.totalorder %s1912_s18, 0 }
  0x55   : > { %s1753_s19 = sand.u32 (!%p1917_p12), 1, %s1540_s25   ;;  %p1918_p2 = scmp.ne.s32.totalorder (!%p1917_p12), %s1908_s12, 0 }
  0x56   : > { %308 = sbr.rel (%p1917_p12) target bundleno = 811 (0x32b), region = 48  ;;  %s1162_s8 = sshll.u32 (!%p1917_p12), %s1753_s19, 6 }
  0x57   : > { %s311_s11 = scalar_lea.sflag (!%p1917_p12), [#allocation3], %s1753_s19  ;;  %s1757_s9 = scalar_lea.vmem (!%p1917_p12), [#allocation2], %s1162_s8 }
  0x5d   : > { %1519 = dma.done.wait (%p1918_p2), %s311_s11, 1024  }
  0x5e   : > { %1521 = vsyncadd (%p1918_p2), %s311_s11, 4294966272  ;;  %p1919_p9 = scmp.ne.s32.totalorder %s1906_s10, 0 }
  0x60   : > { %1523 = dma.done.wait (%p1919_p9), [#allocation5], 32  }
  0x61   : > { %1525 = vsyncadd (%p1919_p9), [#allocation5], 4294967264 }
  0x62   : > { %1527 = dma.done.wait (%p1919_p9), [#allocation8], 16  }
  0x63   : > { %1529 = vsyncadd (%p1919_p9), [#allocation8], 4294967280 }
  0x64   : > { %327 = sfence }
  0x65   : > { %s361_s2 = sld [smem:[#allocation6]]  ;;  %v1563_v0 = vmov 0.0|0.0   ;;  %s1166_s12 = sld [smem:[#allocation6 + $0x1]]  ;;  %v362_v1 = vld [vmem:[%s1757_s9] sm:$0xff]  ;;  %v363_v2 = vld [vmem:[%s1757_s9 + $0x8] sm:$0xff]  ;;  %v1167_v3 = vld [vmem:[%s1757_s9 + $0x10] sm:$0xff] }
  0x66   : > { %1284 = vmatprep.subr.bf16.mxu0 %v1563_v0  ;;  %1287 = vmatprep.subr.bf16.mxu1 %v1563_v0  ;;  %s1169_s18 = sld [smem:[#allocation6 + $0x2]]  ;;  %s1172_s22 = sld [smem:[#allocation6 + $0x3]]  ;;  %vm1564_vm0 = vmmov 0   ;;  %v1565_v4 = vmov 0.0   ;;  %v1168_v5 = vld [vmem:[%s1757_s9 + $0x18] sm:$0xff]  ;;  %v1170_v6 = vld [vmem:[%s1757_s9 + $0x20] sm:$0xff] }
  0x67   : > { %1232 = vmatprep.mubr.msk.f32.mxu0 %vm1564_vm0, %v1565_v4  ;;  %1239 = vmatprep.mubr.msk.f32.mxu1 %vm1564_vm0, %v1565_v4  ;;  %v1171_v7 = vld [vmem:[%s1757_s9 + $0x28] sm:$0xff]  ;;  %v1173_v13 = vld [vmem:[%s1757_s9 + $0x30] sm:$0xff]  ;;  %v1174_v14 = vld [vmem:[%s1757_s9 + $0x38] sm:$0xff]  ;;  %vm394_vm1 = vcmask 130048   ;;  %s1187_s10 = sld [smem:[#allocation6 + $0x83]]  ;;  %s686_s23 = sld [smem:[#allocation7]] }
  0x68   : > { %v357_v28 = vld [vmem:[%s1892_s5] sm:$0xff]  ;;  %v358_v29 = vld [vmem:[%s1892_s5 + $0x8] sm:$0xff]  ;;  %s1165_s15 = sshll.u32 %s1753_s19, 4  ;;  %vm695_vm2 = vcmask 64512   ;;  %s1194_s21 = sld [smem:[#allocation7 + $0x1]] }
  0x69   : > { %v359_v30 = vld [vmem:[%s1893_s6] sm:$0xff]  ;;  %v360_v31 = vld [vmem:[%s1893_s6 + $0x8] sm:$0xff]  ;;  %v1291_v35 = vpack.c.bf16 %v358_v29, %v357_v28  ;;  %s353_s17 = scalar_lea.vmem [#allocation9], %s1165_s15  ;;  %s1203_s20 = sshll.u32 %s1548_s27, 8 }
  0x6a   : > { %v355_v33 = vld [vmem:[%s1890_s3] sm:$0xff]  ;;  %v1294_v36 = vpack.c.bf16 %v360_v31, %v359_v30  ;;  %s1039_s29 = sshll.u32 %s353_s17, 4  ;;  %s1835_s11 = scalar_lea.hbm %s1894_s7, %s1203_s20  ;;  %s1837_s29 = int_to_ptr.vmem [resolvable:$true] %s1039_s29 }
  0x6b   : > { %v364_v8 = vstv %s361_s2  ;;  %v371_v11 = vstv %s1166_s12  ;;  %v356_v34 = vld [vmem:[%s1891_s4] sm:$0xff]  ;;  %s1180_s12 = sld [smem:[#allocation6 + $0x80]]  ;;  %s1024_s9 = scalar_lea.sflag [#allocation4], %s1753_s19 }
  0x6c   : > { %v365_v9 = vmul.f32 %v364_v8, %v362_v1  ;;  %v366_v10 = vmul.f32 %v364_v8, %v363_v2  ;;  %v380_v12 = vstv %s1169_s18  ;;  %v372_v15 = vmul.f32 %v1167_v3, %v371_v11  ;;  %s1181_s18 = sld [smem:[#allocation6 + $0x81]]  ;;  %s1466_s2 = scalar_lea.vmem %s1837_s29, 256 }
  0x6d   : > { %v373_v16 = vmul.f32 %v1168_v5, %v371_v11  ;;  %v381_v17 = vmul.f32 %v1170_v6, %v380_v12  ;;  %v382_v18 = vmul.f32 %v1171_v7, %v380_v12  ;;  %v389_v19 = vstv %s1172_s22  ;;  %s1184_s22 = sld [smem:[#allocation6 + $0x82]]  ;;  %p1467_p5 = scmp.ne.s32.totalorder %s1837_s29, %s1466_s2 }
  0x6e   : > { %v374_v20 = vadd.f32 %v372_v15, %v365_v9  ;;  %v390_v22 = vmul.f32 %v1173_v13, %v389_v19  ;;  %v391_v23 = vmul.f32 %v1174_v14, %v389_v19  ;;  %v722_v48 = vstv %s1187_s10  ;;  %p1920_p0 = scmp.ne.s32.totalorder %s1909_s13, 0  ;;  %s1566_s27 = smov [#allocation9]  }
  0x6f   : > { %v375_v21 = vadd.f32 %v373_v16, %v366_v10  ;;  %v723_v51 = vmul.f32 %v1173_v13, %v722_v48  ;;  %v724_v52 = vmul.f32 %v1174_v14, %v722_v48  ;;  %v687_v63 = vstv %s686_s23 }
  0x70   : > { %v383_v24 = vadd.f32 %v381_v17, %v374_v20  ;;  %v1013_v15 = vstv %s1194_s21  ;;  %p1468_p1 = pnand %p1467_p5, %p1920_p0 }
  0x71   : > { %v384_v25 = vadd.f32 %v382_v18, %v375_v21  ;;  %v700_v37 = vstv %s1180_s12  ;;  %s1470_s12 = sshll.u32 %s1566_s27, 4  ;;  %s1471_s12 = int_to_ptr.vmem [resolvable:$false] %s1470_s12 }
  0x72   : > { %v392_v26 = vadd.f32 %v390_v22, %v383_v24  ;;  %v706_v38 = vstv %s1181_s18  ;;  %v701_v39 = vmul.f32 %v700_v37, %v362_v1  ;;  %v702_v40 = vmul.f32 %v700_v37, %v363_v2  ;;  %p1469_p6 = pneg %p1468_p1  ;;  %s1472_s18 = scalar_lea.vmem %s1471_s12, 512 }
  0x73   : > { %v393_v27 = vadd.f32 %v391_v23, %v384_v25  ;;  %v707_v41 = vmul.f32 %v1167_v3, %v706_v38  ;;  %v708_v42 = vmul.f32 %v1168_v5, %v706_v38  ;;  %v714_v43 = vstv %s1184_s22  ;;  %p1473_p11 = scmp.lt.s32.totalorder %s1837_s29, %s1471_s12  ;;  %p1474_p7 = scmp.lt.s32.totalorder %s1472_s18, %s1466_s2 }
  0x74   : > { %v715_v46 = vmul.f32 %v1170_v6, %v714_v43  ;;  %v716_v47 = vmul.f32 %v1171_v7, %v714_v43 }
  0x75   : > { %v1285_v32 = vpack.c.bf16 %v393_v27, %v392_v26  ;;  %v709_v44 = vadd.f32 %v707_v41, %v701_v39  ;;  %v710_v45 = vadd.f32 %v708_v42, %v702_v40  ;;  %p1475_p3 = por %p1474_p7, %p1473_p11 }
  0x77   : > { %1286 = vmatpush3.bf16.msra.mxu0 %v1285_v32  ;;  %1289 = vmatpush3.bf16.msra.mxu1 %v1285_v32  ;;  %v717_v49 = vadd.f32 %v715_v46, %v709_v44  ;;  %v718_v50 = vadd.f32 %v716_v47, %v710_v45  ;;  %p1476_p8 = pnand %p1475_p3, %p1469_p6 }
  0x78   : > { %1290 = vmatprep.subr.bf16.mxu0 %v1563_v0  ;;  %1293 = vmatprep.subr.bf16.mxu1 %v1563_v0 }
  0x79   : > { %v725_v53 = vadd.f32 %v723_v51, %v717_v49  ;;  %v726_v54 = vadd.f32 %v724_v52, %v718_v50 }
  0x7a   : > { %1233 = vmatmul.mubr.msk.f32.vlgmr.msra.gmra.mrb[0].mxu0 %vm394_vm1, %v355_v33  ;;  %1240 = vmatmul.mubr.msk.f32.vlgmr.msra.gmra.mrb[0].mxu1 %vm394_vm1, %v356_v34 }
  0x7b   : > { %1292 = vmatpush3.bf16.msra.mxu0 %v1291_v35  ;;  %1295 = vmatpush3.bf16.msra.mxu1 %v1294_v36  ;;  %v1297_v57 = vpack.c.bf16 %v726_v54, %v725_v53 }
  0x7c   : > { %1246 = vmatprep.mubr.msk.f32.mxu0 %vm1564_vm0, %v1565_v4  ;;  %1253 = vmatprep.mubr.msk.f32.mxu1 %vm1564_vm0, %v1565_v4 }
  0x7d   : > { %1296 = vmatprep.subr.bf16.mxu0 %v1563_v0  ;;  %1299 = vmatprep.subr.bf16.mxu1 %v1563_v0 }
 0x14d   : > { %v464_v55 = vpop.f32.mrb[0].mxu0  ;;  %v537_v56 = vpop.f32.mrb[0].mxu1 }
 0x14e   : > { %v541_v58 = vmax.f32 %v464_v55, %v537_v56  ;;  %v1234_v59 = vpop.f32.mrb[1].mxu0  ;;  %v1241_v60 = vpop.f32.mrb[1].mxu1 }
 0x150   : > { %1247 = vmatmul.mubr.msk.f32.vlgmr.msra.gmra.mrb[2].mxu0 %vm394_vm1, %v541_v58  ;;  %1254 = vmatmul.mubr.msk.f32.vlgmr.msra.gmra.mrb[2].mxu1 %vm394_vm1, %v541_v58 }
 0x151   : > { %1298 = vmatpush3.bf16.msra.mxu0 %v1297_v57  ;;  %1301 = vmatpush3.bf16.msra.mxu1 %v1297_v57 }
 0x152   : > { %1260 = vmatprep.mubr.msk.f32.mxu0 %vm1564_vm0, %v1565_v4  ;;  %1267 = vmatprep.mubr.msk.f32.mxu1 %vm1564_vm0, %v1565_v4 }
 0x153   : > { %1302 = vmatprep.subr.bf16.mxu0 %v1563_v0  ;;  %1305 = vmatprep.subr.bf16.mxu1 %v1563_v0 }
 0x154   : > { %1261 = vmatmul.mubr.msk.f32.vlgmr.msra.gmra.mrb[4].mxu0 %vm394_vm1, %v355_v33  ;;  %1268 = vmatmul.mubr.msk.f32.vlgmr.msra.gmra.mrb[4].mxu1 %vm394_vm1, %v356_v34 }
 0x155   : > { %1304 = vmatpush3.bf16.msra.mxu0 %v1291_v35  ;;  %1307 = vmatpush3.bf16.msra.mxu1 %v1294_v36 }
 0x156   : > { %1274 = vmatprep.mubr.msk.f32.mxu0 %vm1564_vm0, %v1565_v4  ;;  %1281 = vmatprep.mubr.msk.f32.mxu1 %vm1564_vm0, %v1565_v4 }
 0x223   : > { %v611_v61 = vpop.f32.mrb[2].mxu0  ;;  %v681_v62 = vpop.f32.mrb[2].mxu1 }
 0x224   : > { %v685_v1 = vmax.f32 %v611_v61, %v681_v62  ;;  %v1248_v2 = vpop.f32.mrb[3].mxu0  ;;  %v1255_v0 = vpop.f32.mrb[3].mxu1 }
 0x226   : > { %v688_v3 = vadd.f32 %v687_v63, %v685_v1 }
 0x227   : > { %v793_v5 = vpop.f32.mrb[4].mxu0  ;;  %v863_v6 = vpop.f32.mrb[4].mxu1 }
 0x228   : > { %v1179_v7 = vmul.f32 -1.442695, %v688_v3  ;;  %v867_v8 = vmax.f32 %v793_v5, %v863_v6  ;;  %v1262_v9 = vpop.f32.mrb[5].mxu0  ;;  %v1269_v10 = vpop.f32.mrb[5].mxu1 }
 0x22a   : > { %1398 = vpow2.f32 %v1179_v7  ;;  %1275 = vmatmul.mubr.msk.f32.vlgmr.msra.gmra.mrb[6].mxu0 %vm394_vm1, %v867_v8  ;;  %1282 = vmatmul.mubr.msk.f32.vlgmr.msra.gmra.mrb[6].mxu1 %vm394_vm1, %v867_v8 }
 0x234   : > { %v1399_v4 = vpop.eup %1398 }
 0x235   : > { %v692_v11 = vadd.f32 1.0, %v1399_v4 }
 0x237   : > { %1400 = vrcp.f32 %v692_v11 }
 0x241   : > { %v1401_v12 = vpop.eup %1400 }
 0x242   : > { %696 = vst.msk [vmem:[%s353_s17] sm:$0xff] %vm695_vm2, %v1401_v12 }
 0x2fd   : > { %v937_v13 = vpop.f32.mrb[6].mxu0  ;;  %v1007_v14 = vpop.f32.mrb[6].mxu1 }
 0x2fe   : > { %v1011_v16 = vmax.f32 %v937_v13, %v1007_v14  ;;  %v1276_v17 = vpop.f32.mrb[7].mxu0  ;;  %v1283_v18 = vpop.f32.mrb[7].mxu1 }
 0x300   : > { %v1014_v19 = vadd.f32 %v1013_v15, %v1011_v16 }
 0x302   : > { %v1195_v20 = vmul.f32 -1.442695, %v1014_v19 }
 0x304   : > { %1402 = vpow2.f32 %v1195_v20 }
 0x30e   : > { %v1403_v21 = vpop.eup %1402 }
 0x30f   : > { %v1018_v22 = vadd.f32 1.0, %v1403_v21 }
 0x311   : > { %1404 = vrcp.f32 %v1018_v22 }
 0x31b   : > { %v1405_v23 = vpop.eup %1404 }
 0x31c   : > { %1196 = vst.msk [vmem:[%s353_s17 + $0x8] sm:$0xff] %vm695_vm2, %v1405_v23 }
 0x31d   : > { %1479 = shalt.err (!%p1476_p8)
}
 0x31e   : > { %s1480_s22 = scalar_lea.hbm %s1835_s11, 256  ;;  %s1484_s15 = scalar_lea.hbm %s1894_s7, 512 }
 0x31f   : > { %p1481_p13 = scmp.ne.s32.totalorder %s1835_s11, %s1480_s22  ;;  %p1485_p12 = scmp.lt.u32.totalorder %s1835_s11, %s1894_s7 }
 0x320   : > { %p1486_p2 = scmp.lt.u32.totalorder %s1484_s15, %s1480_s22  ;;  %p1488_p5 = scmp.lt.u32.totalorder %s1480_s22, %s1835_s11 }
 0x321   : > { %p1482_p4 = pnand %p1481_p13, %p1920_p0 }
 0x322   : > { %p1487_p9 = por %p1486_p2, %p1485_p12 }
 0x323   : > { %p1483_p10 = pneg %p1482_p4 }
 0x324   : > { %p1489_p1 = por %p1488_p5, %p1487_p9 }
 0x326   : > { %p1490_p6 = pnand %p1489_p1, %p1483_p10 }
 0x328   : > { %1493 = shalt.err (!%p1490_p6)
}
 0x329   : > { %s1567_s20 = smov 128   ;;  %s1568_s30 = smov 8  }
 0x32a   : > { %1318 = dma.vmem_to_hbm [thread:$0]  (%p1920_p0), %s1837_s29, 256, %s1835_s11, %s1024_s9, %s1567_s20, %s1567_s20, %s1568_s30  }
 0x32b PF: > { %s1921_s8 = sld [smem:[#allocation14_spill]]  ;;  %s1054_s2 = sand.u32 1, %s1536_s24  }
 0x32c   : > { %p1922_p11 = scmp.ne.s32.totalorder %s1910_s14, 0  ;;  %s1055_s27 = scalar_lea.sflag [#allocation4], %s1054_s2 }
 0x331   : > { %p1923_p7 = scmp.ge.s32.totalorder %s1921_s8, 2 }
 0x333   : > { %p1332_p3 = pnand %p1923_p7, %p1922_p11 }
 0x335   : > { %1531 = dma.done.wait (!%p1332_p3), %s1055_s27, 256  }
 0x336   : > { %1533 = vsyncadd (!%p1332_p3), %s1055_s27, 4294967040  ;;  %s25_s29 = sadd.s32 1, %s1921_s8   ;;  %s1924_s24 = smov %s1540_s25 }
 0x337   : > { %p22_p8 = scmp.ge.s32.totalorder %s25_s29, 4   ;;  %s1925_s25 = smov %s1544_s26 }
 0x338   : > { %s1926_s26 = smov %s1720_s1  ;;  %s1927_s27 = smov %s1552_s28 }
 0x339   : > { %s1928_s28 = smov %s1930_s16  ;;  %24 = sbr.rel (!%p22_p8) target bundleno = 11 (0xb), region = 106 }
 0x340   :  { %1060 = vsyncpa [#allocation3], 1 }
 0x341   :  { %1062 = vsyncpa [#allocation3 + $0x1], 1 }
 0x342   :  { %1063 = vsyncpa [#allocation4], 1 }
 0x343   :  { %1065 = vsyncpa [#allocation4 + $0x1], 1 }
 0x344   :  { %1066 = vsyncpa [#allocation5], 1 }
 0x345   :  { %1068 = vsyncpa [#allocation5 + $0x1], 1 }
 0x346   :  { %1069 = vsyncpa [#allocation8], 1 }

</bundles_post_ra>
